<compile_context>
chip_gen: v7x
topology: tpu7x:2x2x1
jax: 0.10.0
libtpu: 0.0.40
codegen_flags: <defaults>
</compile_context>

<pallas_src>
import functools

import jax
import jax.numpy as jnp
from jax import lax
from jax.experimental import pallas as pl
from jax.experimental.pallas import tpu as pltpu


# ----------------------------- kernels -----------------------------------------

def _layer1_kernel(a_ref, xw1_ref, b1_ref, w2_ref, hv_ref, acc_ref, *, tk):
    """hv[i-tile] = relu( sum_k A_hat[i,k] @ XW1[k] + b1 ) @ w2, reduced over grid axis 1.

    a_ref:   (tm, tk)       bf16   streamed A_hat tile
    xw1_ref: (np_, hidden)  bf16   resident (constant index_map -> DMA'd once)
    b1_ref:  (1, hidden)    f32    resident
    w2_ref:  (1, hidden)    f32    resident
    hv_ref:  (tm, 1)        bf16   output tile (written on last k only)
    acc_ref: (tm, hidden)   f32    VMEM accumulator
    """
    k = pl.program_id(1)

    @pl.when(k == 0)
    def _():
        acc_ref[...] = jnp.zeros_like(acc_ref)

    start = pl.multiple_of(k * tk, tk)
    acc_ref[...] += jnp.dot(a_ref[...], xw1_ref[pl.ds(start, tk), :],
                            preferred_element_type=jnp.float32)

    @pl.when(k == pl.num_programs(1) - 1)
    def _():
        h = jnp.maximum(acc_ref[...] + b1_ref[...], 0.0)            # (tm, hidden)
        # W2 reduction on VPU/XLU (lane reduce) instead of a 1-wide MXU matmul.
        hv = jnp.sum(h * w2_ref[...], axis=-1, keepdims=True)       # (tm, 1)
        hv_ref[...] = hv.astype(hv_ref.dtype)


def _layer2_kernel(a_ref, hv_ref, b2_ref, o_ref, acc_ref, *, tk):
    """O[i-tile] = sum_k A_hat[i,k] @ hv[k] + b2, reduced over grid axis 1.

    a_ref:  (tm, tk)  bf16  streamed A_hat tile
    hv_ref: (np_, 1)  bf16  resident
    b2_ref: (1,)      f32   SMEM scalar
    o_ref:  (tm, 1)   f32   output tile
    acc_ref:(tm, 1)   f32   VMEM accumulator
    """
    k = pl.program_id(1)

    @pl.when(k == 0)
    def _():
        acc_ref[...] = jnp.zeros_like(acc_ref)

    start = pl.multiple_of(k * tk, tk)
    # 1-column RHS wastes MXU columns, but the kernel is HBM-bound on A_hat, so the
    # MXU slack is free on all generations.
    acc_ref[...] += jnp.dot(a_ref[...], hv_ref[pl.ds(start, tk), :],
                            preferred_element_type=jnp.float32)

    @pl.when(k == pl.num_programs(1) - 1)
    def _():
        o_ref[...] = (acc_ref[...] + b2_ref[0]).astype(o_ref.dtype)


# ----------------------------- wrapper ------------------------------------------

def _round_up(v, m):
    return ((v + m - 1) // m) * m


def _pick_row_tile(np_):
    # Prefer >= 2 row tiles so the "parallel" axis actually splits across v7x's 2 TCs.
    for c in (512, 256, 128, 64):
        if np_ % c == 0 and np_ // c >= 2:
            return c
    return np_


def _pick_k_tile(np_):
    # Large reduction / lane tiles of A_hat (0.25 - 2 MiB bf16 per buffer).
    for c in (2048, 1024, 512, 256, 128):
        if np_ % c == 0:
            return c
    return np_


def _build_a_hat(edge_index, n, n_pad=None):
    """Dense GCN aggregation matrix A_hat = D^-1/2 (A + I) D^-1/2 (PyG gcn_norm).

    a_hat[i, j] != 0 means node i aggregates from node j (edge j -> i); duplicate edges
    are summed (PyG message passing).  Self-loops are added only for nodes that do not
    already have one (add_remaining_self_loops semantics).  When n_pad > n, the padded
    rows/columns are identically zero.
    """
    n_pad = n if n_pad is None else n_pad
    src, dst = edge_index[0], edge_index[1]
    a = jnp.zeros((n_pad, n_pad), jnp.float32).at[dst, src].add(1.0)
    idx = jnp.arange(n)
    diag = a[idx, idx]
    a = a.at[idx, idx].add(jnp.where(diag > 0.0, 0.0, 1.0))
    deg = jnp.sum(a, axis=1)                                   # in-degree incl. self-loop
    d = jnp.where(deg > 0.0, lax.rsqrt(deg), 0.0)
    return d[:, None] * a * d[None, :]


def graph_ebc_forward(x, edge_index, w1, b1, w2, b2):
    """x: (N, in_channels) f32; edge_index: (2, E) int32.  Returns (N,) f32."""
    n = x.shape[0]
    hidden = w1.shape[1]

    np_ = _round_up(max(n, 128), 128)
    tm = _pick_row_tile(np_)
    tk = _pick_k_tile(np_)

    # Built directly at the padded shape; normalization + bf16 cast fused (no extra
    # padded-copy pass over the N^2 matrix).
    a_pad = _build_a_hat(edge_index, n, np_).astype(jnp.bfloat16)

    # Tiny input projection (K = in_channels) stays in XLA; kernels only do the
    # bandwidth-critical N x N aggregations.  Padded rows are zero.
    xw1_pad = jnp.zeros((np_, hidden), jnp.bfloat16).at[:n, :].set(
        (x @ w1).astype(jnp.bfloat16))

    b1_2d = b1.reshape(1, hidden).astype(jnp.float32)
    w2_row = w2.reshape(1, hidden).astype(jnp.float32)          # w2 is (hidden, 1)
    b2_1d = b2.reshape(1).astype(jnp.float32)

    grid = (np_ // tm, np_ // tk)
    cparams = pltpu.CompilerParams(
        dimension_semantics=("parallel", "arbitrary"))

    # ---- layer 1 (+ fused W2 reduce): hv = relu(A_hat @ XW1 + b1) @ w2 ------------
    # NOTE: padded rows of hv hold relu(b1) @ w2 (nonzero), but the padded columns of
    # A_hat are zero and the result is sliced to [:n], so this is harmless.
    hv = pl.pallas_call(
        functools.partial(_layer1_kernel, tk=tk),
        out_shape=jax.ShapeDtypeStruct((np_, 1), jnp.bfloat16),
        grid=grid,
        in_specs=[
            pl.BlockSpec((tm, tk), lambda i, k: (i, k)),         # A_hat: streamed
            pl.BlockSpec((np_, hidden), lambda i, k: (0, 0)),    # XW1:   resident
            pl.BlockSpec((1, hidden), lambda i, k: (0, 0)),      # b1:    resident
            pl.BlockSpec((1, hidden), lambda i, k: (0, 0)),      # w2:    resident
        ],
        out_specs=pl.BlockSpec((tm, 1), lambda i, k: (i, 0)),
        scratch_shapes=[pltpu.VMEM((tm, hidden), jnp.float32)],
        compiler_params=cparams,
    )(a_pad, xw1_pad, b1_2d, w2_row)

    # ---- layer 2: O = A_hat @ hv + b2 ---------------------------------------------
    out_pad = pl.pallas_call(
        functools.partial(_layer2_kernel, tk=tk),
        out_shape=jax.ShapeDtypeStruct((np_, 1), jnp.float32),
        grid=grid,
        in_specs=[
            pl.BlockSpec((tm, tk), lambda i, k: (i, k)),         # A_hat: streamed
            pl.BlockSpec((np_, 1), lambda i, k: (0, 0)),         # hv:    resident
            pl.BlockSpec(memory_space=pltpu.MemorySpace.SMEM),   # b2:    scalar
        ],
        out_specs=pl.BlockSpec((tm, 1), lambda i, k: (i, 0)),
        scratch_shapes=[pltpu.VMEM((tm, 1), jnp.float32)],
        compiler_params=cparams,
    )(a_pad, hv, b2_1d)

    return out_pad[:n, 0]   # .squeeze()


# ----------------------------- references ---------------------------------------

def _reference_f32(x, edge_index, w1, b1, w2, b2):
    a = _build_a_hat(edge_index, x.shape[0])
    h = jnp.maximum(a @ (x @ w1) + b1[None, :], 0.0)
    o = a @ (h @ w2) + b2[None, :]
    return o[:, 0]


def _reference_bf16_mirror(x, edge_index, w1, b1, w2, b2):
    """Mirrors the kernel's bf16 quantization points (A_hat, XW1, hv) exactly."""
    a = _build_a_hat(edge_index, x.shape[0]).astype(jnp.bfloat16).astype(jnp.float32)
    xw1 = (x @ w1).astype(jnp.bfloat16).astype(jnp.float32)
    h = jnp.maximum(a @ xw1 + b1[None, :], 0.0)
    hv = (h @ w2).astype(jnp.bfloat16).astype(jnp.float32)
    o = a @ hv + b2[None, :]
    return o[:, 0]


# ----------------------------- test ----------------------------------------------

if __name__ == "__main__":
    # Small shapes: N=16 nodes, in_channels=4, hidden_channels=32.
    N, IN_CH, HIDDEN = 16, 4, 32

    key = jax.random.PRNGKey(0)
    kx, kw1, kw2 = jax.random.split(key, 3)

    # Node features.
    x = jax.random.normal(kx, (N, IN_CH), dtype=jnp.float32)

    # Deterministic ring graph (undirected: edges both directions).
    src = jnp.arange(N, dtype=jnp.int32)
    dst = (src + 1) % N
    edge_index = jnp.concatenate(
        [jnp.stack([src, dst], axis=0), jnp.stack([dst, src], axis=0)], axis=1)

    # GCNConv-shaped params: W1 (in,hidden), b1 (hidden), W2 (hidden,1), b2 (1).
    w1 = jax.random.normal(kw1, (IN_CH, HIDDEN), dtype=jnp.float32) * (1.0 / jnp.sqrt(IN_CH))
    b1 = jnp.zeros((HIDDEN,), dtype=jnp.float32)
    w2 = jax.random.normal(kw2, (HIDDEN, 1), dtype=jnp.float32) * (1.0 / jnp.sqrt(HIDDEN))
    b2 = jnp.zeros((1,), dtype=jnp.float32)

    fwd = jax.jit(graph_ebc_forward)
    out = fwd(x, edge_index, w1, b1, w2, b2)
    out = jax.block_until_ready(out)
    assert out.shape == (N,)

    # Tight check vs a reference mirroring the bf16 quantization points.
    ref_mirror = _reference_bf16_mirror(x, edge_index, w1, b1, w2, b2)
    assert jnp.allclose(out, ref_mirror, atol=1e-3, rtol=1e-3), "mismatch vs bf16-mirrored reference"

    # Loose sanity check vs the full-f32 reference (bf16 quantization error budget).
    ref_f32 = _reference_f32(x, edge_index, w1, b1, w2, b2)
    assert jnp.allclose(out, ref_f32, atol=5e-2, rtol=5e-2), "mismatch vs f32 reference"

    print("KERNEL_OK")
</pallas_src>

<mosaic_0001>
module attributes {stable_mosaic.version = 11 : i64} {
  func.func private @main(%arg0: i32) attributes {dimension_semantics = [#tpu.dimension_semantics<core_parallel>], iteration_bounds = array<i64: 2>, tpu.core_type = #tpu.core_type<sc_scalar_subcore>, window_params = []} {
    return
  }
}

module attributes {stable_mosaic.version = 11 : i64} {
  func.func private @main(%arg0: i32) attributes {dimension_semantics = [#tpu.dimension_semantics<core_parallel>], iteration_bounds = array<i64: 2>, tpu.core_type = #tpu.core_type<sc_scalar_subcore>, window_params = []} {
    return
  }
}

module attributes {stable_mosaic.version = 11 : i64} {
  func.func @_layer2_kernel(%arg0: i32, %arg1: i32, %arg2: memref<64x128xbf16, #tpu.memory_space<vmem>>, %arg3: memref<128x1xbf16, #tpu.memory_space<vmem>>, %arg4: memref<1xf32, #tpu.memory_space<smem>>, %arg5: memref<64x1xf32, #tpu.memory_space<vmem>>, %arg6: memref<64x1xf32, #tpu.memory_space<vmem>>) attributes {dimension_semantics = [#tpu.dimension_semantics<parallel>, #tpu.dimension_semantics<arbitrary>], iteration_bounds = array<i64: 2, 1>, scalar_prefetch = 0 : i64, scratch_operands = 1 : i64, tpu.core_type = #tpu.core_type<tc>, window_params = [{transform_indices = @transform_0, window_bounds = array<i64: 64, 128>}, {pipeline_mode = #tpu.pipeline_mode<synchronous>, transform_indices = @transform_1, window_bounds = array<i64: 128, 1>}, {transform_indices = @transform_2, window_bounds = array<i64: 1>}, {transform_indices = @transform_3, window_bounds = array<i64: 64, 1>}]} {
    %c0_i32 = arith.constant 0 : i32
    %0 = arith.cmpi eq, %arg1, %c0_i32 : i32
    %1 = arith.extui %0 : i1 to i32
    %c0_i32_0 = arith.constant 0 : i32
    %2 = arith.cmpi ne, %1, %c0_i32_0 : i32
    scf.if %2 {
      %cst_9 = arith.constant 0.000000e+00 : f32
      %15 = vector.broadcast %cst_9 : f32 to vector<64x1xf32>
      %c0_10 = arith.constant 0 : index
      %c0_11 = arith.constant 0 : index
      %16 = vector.load %arg6[%c0_10, %c0_11] : memref<64x1xf32, #tpu.memory_space<vmem>>, vector<64x1xf32>
      tpu.vector_store %arg6[%c0_10, %c0_11], %15 {strides = array<i32>} : memref<64x1xf32, #tpu.memory_space<vmem>>, vector<64x1xf32>,
    } else {
    }
    %c128_i32 = arith.constant 128 : i32
    %3 = arith.muli %arg1, %c128_i32 : i32
    %4 = tpu.assume_multiple %3, 128 : i32
    %c0 = arith.constant 0 : index
    %c0_1 = arith.constant 0 : index
    %5 = vector.load %arg6[%c0, %c0_1] : memref<64x1xf32, #tpu.memory_space<vmem>>, vector<64x1xf32>
    %c0_2 = arith.constant 0 : index
    %c0_3 = arith.constant 0 : index
    %6 = vector.load %arg2[%c0_2, %c0_3] : memref<64x128xbf16, #tpu.memory_space<vmem>>, vector<64x128xbf16>
    %7 = arith.index_cast %4 : i32 to index
    %c0_4 = arith.constant 0 : index
    %8 = vector.load %arg3[%7, %c0_4] : memref<128x1xbf16, #tpu.memory_space<vmem>>, vector<128x1xbf16>
    %cst = arith.constant dense<0.000000e+00> : vector<64x1xf32>
    %9 = tpu.matmul %6, %8, %cst {dimension_numbers = #tpu.dot_dimension_numbers<[1], [0], [0], [1], [0, 0, 1, 1], [], []>} : vector<64x128xbf16>, vector<128x1xbf16>, vector<64x1xf32> -> vector<64x1xf32>
    %10 = arith.addf %5, %9 : vector<64x1xf32>
    %c0_5 = arith.constant 0 : index
    %c0_6 = arith.constant 0 : index
    %11 = vector.load %arg6[%c0_5, %c0_6] : memref<64x1xf32, #tpu.memory_space<vmem>>, vector<64x1xf32>
    tpu.vector_store %arg6[%c0_5, %c0_6], %10 {strides = array<i32>} : memref<64x1xf32, #tpu.memory_space<vmem>>, vector<64x1xf32>,
    %c0_i32_7 = arith.constant 0 : i32
    %12 = arith.cmpi eq, %arg1, %c0_i32_7 : i32
    %13 = arith.extui %12 : i1 to i32
    %c0_i32_8 = arith.constant 0 : i32
    %14 = arith.cmpi ne, %13, %c0_i32_8 : i32
    scf.if %14 {
      %c0_9 = arith.constant 0 : index
      %c0_10 = arith.constant 0 : index
      %15 = vector.load %arg6[%c0_9, %c0_10] : memref<64x1xf32, #tpu.memory_space<vmem>>, vector<64x1xf32>
      %c0_11 = arith.constant 0 : index
      %16 = memref.load %arg4[%c0_11] : memref<1xf32, #tpu.memory_space<smem>>
      %17 = vector.broadcast %16 : f32 to vector<64x1xf32>
      %18 = arith.addf %15, %17 : vector<64x1xf32>
      %c0_12 = arith.constant 0 : index
      %c0_13 = arith.constant 0 : index
      %19 = vector.load %arg5[%c0_12, %c0_13] : memref<64x1xf32, #tpu.memory_space<vmem>>, vector<64x1xf32>
      tpu.vector_store %arg5[%c0_12, %c0_13], %18 {strides = array<i32>} : memref<64x1xf32, #tpu.memory_space<vmem>>, vector<64x1xf32>,
    } else {
    }
    return
  }
  func.func @transform_0(%arg0: i32, %arg1: i32) -> (i32, i32) {
    %c0_i32 = arith.constant 0 : i32
    return %arg0, %arg1 : i32, i32
  }
  func.func @transform_1(%arg0: i32, %arg1: i32) -> (i32, i32) {
    %c0_i32 = arith.constant 0 : i32
    %c0_i32_0 = arith.constant 0 : i32
    %c0_i32_1 = arith.constant 0 : i32
    return %c0_i32, %c0_i32_0 : i32, i32
  }
  func.func @transform_2(%arg0: i32, %arg1: i32) -> i32 {
    %c0_i32 = arith.constant 0 : i32
    %c0_i32_0 = arith.constant 0 : i32
    return %c0_i32 : i32
  }
  func.func @transform_3(%arg0: i32, %arg1: i32) -> (i32, i32) {
    %c0_i32 = arith.constant 0 : i32
    %c0_i32_0 = arith.constant 0 : i32
    return %arg0, %c0_i32 : i32, i32
  }
}

module attributes {stable_mosaic.version = 11 : i64} {
  func.func @_layer1_kernel(%arg0: i32, %arg1: i32, %arg2: memref<64x128xbf16, #tpu.memory_space<vmem>>, %arg3: memref<128x32xbf16, #tpu.memory_space<vmem>>, %arg4: memref<1x32xf32, #tpu.memory_space<vmem>>, %arg5: memref<1x32xf32, #tpu.memory_space<vmem>>, %arg6: memref<64x1xbf16, #tpu.memory_space<vmem>>, %arg7: memref<64x32xf32, #tpu.memory_space<vmem>>) attributes {dimension_semantics = [#tpu.dimension_semantics<parallel>, #tpu.dimension_semantics<arbitrary>], iteration_bounds = array<i64: 2, 1>, scalar_prefetch = 0 : i64, scratch_operands = 1 : i64, tpu.core_type = #tpu.core_type<tc>, window_params = [{transform_indices = @transform_0, window_bounds = array<i64: 64, 128>}, {pipeline_mode = #tpu.pipeline_mode<synchronous>, transform_indices = @transform_1, window_bounds = array<i64: 128, 32>}, {pipeline_mode = #tpu.pipeline_mode<synchronous>, transform_indices = @transform_2, window_bounds = array<i64: 1, 32>}, {pipeline_mode = #tpu.pipeline_mode<synchronous>, transform_indices = @transform_3, window_bounds = array<i64: 1, 32>}, {transform_indices = @transform_4, window_bounds = array<i64: 64, 1>}]} {
    %c0_i32 = arith.constant 0 : i32
    %0 = arith.cmpi eq, %arg1, %c0_i32 : i32
    %1 = arith.extui %0 : i1 to i32
    %c0_i32_0 = arith.constant 0 : i32
    %2 = arith.cmpi ne, %1, %c0_i32_0 : i32
    scf.if %2 {
      %cst_9 = arith.constant 0.000000e+00 : f32
      %15 = vector.broadcast %cst_9 : f32 to vector<64x32xf32>
      %c0_10 = arith.constant 0 : index
      %c0_11 = arith.constant 0 : index
      %16 = vector.load %arg7[%c0_10, %c0_11] : memref<64x32xf32, #tpu.memory_space<vmem>>, vector<64x32xf32>
      tpu.vector_store %arg7[%c0_10, %c0_11], %15 {strides = array<i32>} : memref<64x32xf32, #tpu.memory_space<vmem>>, vector<64x32xf32>,
    } else {
    }
    %c128_i32 = arith.constant 128 : i32
    %3 = arith.muli %arg1, %c128_i32 : i32
    %4 = tpu.assume_multiple %3, 128 : i32
    %c0 = arith.constant 0 : index
    %c0_1 = arith.constant 0 : index
    %5 = vector.load %arg7[%c0, %c0_1] : memref<64x32xf32, #tpu.memory_space<vmem>>, vector<64x32xf32>
    %c0_2 = arith.constant 0 : index
    %c0_3 = arith.constant 0 : index
    %6 = vector.load %arg2[%c0_2, %c0_3] : memref<64x128xbf16, #tpu.memory_space<vmem>>, vector<64x128xbf16>
    %7 = arith.index_cast %4 : i32 to index
    %c0_4 = arith.constant 0 : index
    %8 = vector.load %arg3[%7, %c0_4] : memref<128x32xbf16, #tpu.memory_space<vmem>>, vector<128x32xbf16>
    %cst = arith.constant dense<0.000000e+00> : vector<64x32xf32>
    %9 = tpu.matmul %6, %8, %cst {dimension_numbers = #tpu.dot_dimension_numbers<[1], [0], [0], [1], [0, 0, 1, 1], [], []>} : vector<64x128xbf16>, vector<128x32xbf16>, vector<64x32xf32> -> vector<64x32xf32>
    %10 = arith.addf %5, %9 : vector<64x32xf32>
    %c0_5 = arith.constant 0 : index
    %c0_6 = arith.constant 0 : index
    %11 = vector.load %arg7[%c0_5, %c0_6] : memref<64x32xf32, #tpu.memory_space<vmem>>, vector<64x32xf32>
    tpu.vector_store %arg7[%c0_5, %c0_6], %10 {strides = array<i32>} : memref<64x32xf32, #tpu.memory_space<vmem>>, vector<64x32xf32>,
    %c0_i32_7 = arith.constant 0 : i32
    %12 = arith.cmpi eq, %arg1, %c0_i32_7 : i32
    %13 = arith.extui %12 : i1 to i32
    %c0_i32_8 = arith.constant 0 : i32
    %14 = arith.cmpi ne, %13, %c0_i32_8 : i32
    scf.if %14 {
      %c0_9 = arith.constant 0 : index
      %c0_10 = arith.constant 0 : index
      %15 = vector.load %arg7[%c0_9, %c0_10] : memref<64x32xf32, #tpu.memory_space<vmem>>, vector<64x32xf32>
      %c0_11 = arith.constant 0 : index
      %c0_12 = arith.constant 0 : index
      %16 = vector.load %arg4[%c0_11, %c0_12] : memref<1x32xf32, #tpu.memory_space<vmem>>, vector<1x32xf32>
      %17 = vector.broadcast %16 : vector<1x32xf32> to vector<64x32xf32>
      %18 = arith.addf %15, %17 : vector<64x32xf32>
      %cst_13 = arith.constant 0.000000e+00 : f32
      %19 = vector.broadcast %cst_13 : f32 to vector<64x32xf32>
      %20 = arith.maximumf %18, %19 : vector<64x32xf32>
      %c0_14 = arith.constant 0 : index
      %c0_15 = arith.constant 0 : index
      %21 = vector.load %arg5[%c0_14, %c0_15] : memref<1x32xf32, #tpu.memory_space<vmem>>, vector<1x32xf32>
      %22 = vector.broadcast %21 : vector<1x32xf32> to vector<64x32xf32>
      %23 = arith.mulf %20, %22 : vector<64x32xf32>
      %cst_16 = arith.constant dense<0.000000e+00> : vector<64xf32>
      %24 = vector.multi_reduction <add>, %23, %cst_16 [1] : vector<64x32xf32> to vector<64xf32>
      %25 = vector.shape_cast %24 : vector<64xf32> to vector<64x1xf32>
      %26 = arith.truncf %25 : vector<64x1xf32> to vector<64x1xbf16>
      %c0_17 = arith.constant 0 : index
      %c0_18 = arith.constant 0 : index
      %27 = vector.load %arg6[%c0_17, %c0_18] : memref<64x1xbf16, #tpu.memory_space<vmem>>, vector<64x1xbf16>
      tpu.vector_store %arg6[%c0_17, %c0_18], %26 {strides = array<i32>} : memref<64x1xbf16, #tpu.memory_space<vmem>>, vector<64x1xbf16>,
    } else {
    }
    return
  }
  func.func @transform_0(%arg0: i32, %arg1: i32) -> (i32, i32) {
    %c0_i32 = arith.constant 0 : i32
    return %arg0, %arg1 : i32, i32
  }
  func.func @transform_1(%arg0: i32, %arg1: i32) -> (i32, i32) {
    %c0_i32 = arith.constant 0 : i32
    %c0_i32_0 = arith.constant 0 : i32
    %c0_i32_1 = arith.constant 0 : i32
    return %c0_i32, %c0_i32_0 : i32, i32
  }
  func.func @transform_2(%arg0: i32, %arg1: i32) -> (i32, i32) {
    %c0_i32 = arith.constant 0 : i32
    %c0_i32_0 = arith.constant 0 : i32
    %c0_i32_1 = arith.constant 0 : i32
    return %c0_i32, %c0_i32_0 : i32, i32
  }
  func.func @transform_3(%arg0: i32, %arg1: i32) -> (i32, i32) {
    %c0_i32 = arith.constant 0 : i32
    %c0_i32_0 = arith.constant 0 : i32
    %c0_i32_1 = arith.constant 0 : i32
    return %c0_i32, %c0_i32_0 : i32, i32
  }
  func.func @transform_4(%arg0: i32, %arg1: i32) -> (i32, i32) {
    %c0_i32 = arith.constant 0 : i32
    %c0_i32_0 = arith.constant 0 : i32
    return %arg0, %c0_i32 : i32, i32
  }
}

</mosaic_0001>

<bundles_post_ra>
// kernel: graph_ebc_forward.3
= control target key start
LH: loop header
LB: loop body
LE: loop exit
PB: predicated region body
PF: predicated region fallthrough
CT: control target
= control target key end

     0   :  { %s662_s14 = smov 0   ;;  %s664_s15 = smov 0   ;;  %s753_s0 = inlined_call_operand.vmem [shape: bf16[128,128], index: 0, kind: input, shape index: {}]   ;;  %s754_s1 = inlined_call_operand.vmem [shape: bf16[128,1], index: 1, kind: input, shape index: {}]   ;;  %s755_s2 = inlined_call_operand.<no memory space> [shape: f32[1], index: 2, kind: input, shape index: {}]   ;;  %s756_s3 = inlined_call_operand.vmem [shape: f32[128,1], index: 3, kind: output, shape index: {}]  }
   0x1   :  { %8 = sst [smem:[#allocation3]] %s755_s2  ;;  %s666_s16 = smov 0  }
   0x2 LB: > { %s26_s2 = sadd.s32 1, %s632_s15  ;;  %p506_p0 = scmp.ge.s32.totalorder %s636_s16, 1  ;;  %s636_s16 = sphi %s666_s16, %s14_s16   ;;  %s632_s15 = sphi %s664_s15, %s758_s15   ;;  %s628_s14 = sphi %s662_s14, %s757_s14  }
   0x3   : > { %p28_p1 = scmp.ge.s32.totalorder %s26_s2, 2  ;;  %p156_p2 = scmp.lt.s32.totalorder %s636_s16, 3 }
   0x5   : > { %s760_s2 = smov (%p28_p1, %s26_s2), 0  ;;  %p157_p3 = pnand %p506_p0, %p156_p2 }
   0x6   : > { %v602_v0 = vld [vmem:[%s754_s1] sm:$0xff] (!%p157_p3)   ;;  %s507_s19 = sshll.u32 (!%p157_p3), %s628_s14, 3  ;;  %v603_v1 = vld [vmem:[%s754_s1 + $0x8] sm:$0xff] (!%p157_p3)   ;;  %vm203_vm0 = vcmask (!%p157_p3), 7168   ;;  %v604_v2 = vld [vmem:[%s754_s1 + $0x10] sm:$0xff] (!%p157_p3)   ;;  %v638_v3 = vmov (!%p157_p3), 0.0  }
   0x7   : > { %160 = sbr.rel (%p157_p3) target bundleno = 268 (0x10c), region = 32  ;;  %p184_p4 = scmp.lt.s32.totalorder (!%p157_p3), %s507_s19, 15  ;;  %537 = vmatprep.subr.bf16.mxu0 (!%p157_p3), %v602_v0  ;;  %561 = vmatprep.subr.bf16.mxu1 (!%p157_p3), %v602_v0  ;;  %206 = vst.msk [vmem:[#allocation2 + $0x10] sm:$0xff] (!%p157_p3), %vm203_vm0, %v638_v3  ;;  %204 = vst.msk [vmem:[#allocation2] sm:$0xff] (!%p157_p3), %vm203_vm0, %v638_v3  ;;  %v605_v4 = vld [vmem:[%s754_s1 + $0x18] sm:$0xff] (!%p157_p3)   ;;  %v606_v7 = vld [vmem:[%s754_s1 + $0x20] sm:$0xff] (!%p157_p3)  }
   0x8   : > { %538 = vmatpush3.bf16.msra.mxu0 (!%p157_p3), %v602_v0  ;;  %569 = vmatpush3.bf16.msra.mxu1 (!%p157_p3), %v602_v0  ;;  %205 = vst.msk [vmem:[#allocation2 + $0x8] sm:$0xff] (!%p157_p3), %vm203_vm0, %v638_v3  ;;  %207 = vst.msk [vmem:[#allocation2 + $0x18] sm:$0xff] (!%p157_p3), %vm203_vm0, %v638_v3  ;;  %v607_v8 = vld [vmem:[%s754_s1 + $0x28] sm:$0xff] (!%p157_p3)   ;;  %v608_v9 = vld [vmem:[%s754_s1 + $0x30] sm:$0xff] (!%p157_p3)   ;;  %s414_s11 = sld [smem:[#allocation3]] (!%p157_p3) }
   0x9   : > { %539 = vmatprep.subr.bf16.mxu0 (!%p157_p3), %v603_v1  ;;  %562 = vmatprep.subr.bf16.mxu1 (!%p157_p3), %v603_v1  ;;  %208 = vst.msk [vmem:[#allocation2 + $0x20] sm:$0xff] (!%p157_p3), %vm203_vm0, %v638_v3  ;;  %209 = vst.msk [vmem:[#allocation2 + $0x28] sm:$0xff] (!%p157_p3), %vm203_vm0, %v638_v3  ;;  %v609_v10 = vld [vmem:[%s754_s1 + $0x38] sm:$0xff] (!%p157_p3)  }
   0xa   : > { %210 = vst.msk [vmem:[#allocation2 + $0x30] sm:$0xff] (!%p157_p3), %vm203_vm0, %v638_v3  ;;  %211 = vst.msk [vmem:[#allocation2 + $0x38] sm:$0xff] (!%p157_p3), %vm203_vm0, %v638_v3 }
   0xc   : > { %540 = vmatpush3.bf16.msra.mxu0 (!%p157_p3), %v603_v1  ;;  %570 = vmatpush3.bf16.msra.mxu1 (!%p157_p3), %v603_v1 }
   0xd   : > { %541 = vmatprep.subr.bf16.mxu0 (!%p157_p3), %v604_v2  ;;  %563 = vmatprep.subr.bf16.mxu1 (!%p157_p3), %v604_v2 }
   0xe   : > { %s762_s19 = smov (!%p184_p4, %s507_s19), 15  ;;  %v215_v13 = vld [vmem:[#allocation2 + $0x10] sm:$0xff]  ;;  %v213_v15 = vld [vmem:[#allocation2] sm:$0xff]  ;;  %v415_v37 = vstv %s414_s11 }
   0xf   : > { %s508_s24 = sshll.u32 %s762_s19, 2  ;;  %v216_v19 = vld [vmem:[#allocation2 + $0x18] sm:$0xff]  ;;  %v214_v25 = vld [vmem:[#allocation2 + $0x8] sm:$0xff]  ;;  %s510_s12 = sshll.u32 %s762_s19, 3 }
  0x10   : > { %s703_s27 = scalar_lea.vmem %s753_s0, %s508_s24  ;;  %542 = vmatpush3.bf16.msra.mxu0 %v604_v2  ;;  %571 = vmatpush3.bf16.msra.mxu1 %v604_v2  ;;  %v217_v16 = vld [vmem:[#allocation2 + $0x20] sm:$0xff]  ;;  %v218_v26 = vld [vmem:[#allocation2 + $0x28] sm:$0xff]  ;;  %s196_s17 = scalar_lea.vmem %s756_s3, %s510_s12 }
  0x11   : > { %v610_v5 = vld [vmem:[%s703_s27] sm:$0xff]   ;;  %v611_v6 = vld [vmem:[%s703_s27 + $0x10] sm:$0xff]   ;;  %543 = vmatprep.subr.bf16.mxu0 %v605_v4  ;;  %564 = vmatprep.subr.bf16.mxu1 %v605_v4  ;;  %v612_v11 = vld [vmem:[%s703_s27 + $0x8] sm:$0xff]  }
  0x12   : > { %553 = vmatprep.mubr.bf16.mxu0 %v610_v5  ;;  %557 = vmatprep.mubr.bf16.mxu1 %v611_v6  ;;  %v613_v12 = vld [vmem:[%s703_s27 + $0x18] sm:$0xff]   ;;  %v220_v20 = vld [vmem:[#allocation2 + $0x38] sm:$0xff] }
  0x13   : > { %v219_v14 = vld [vmem:[#allocation2 + $0x30] sm:$0xff] }
  0x14   : > { %544 = vmatpush3.bf16.msra.mxu0 %v605_v4  ;;  %572 = vmatpush3.bf16.msra.mxu1 %v605_v4 }
  0x15   : > { %545 = vmatprep.subr.bf16.mxu0 %v606_v7  ;;  %565 = vmatprep.subr.bf16.mxu1 %v606_v7 }
  0x18   : > { %546 = vmatpush3.bf16.msra.mxu0 %v606_v7  ;;  %573 = vmatpush3.bf16.msra.mxu1 %v606_v7 }
  0x19   : > { %547 = vmatprep.subr.bf16.mxu0 %v607_v8  ;;  %566 = vmatprep.subr.bf16.mxu1 %v607_v8 }
  0x1c   : > { %548 = vmatpush3.bf16.msra.mxu0 %v607_v8  ;;  %574 = vmatpush3.bf16.msra.mxu1 %v607_v8 }
  0x1d   : > { %549 = vmatprep.subr.bf16.mxu0 %v608_v9  ;;  %567 = vmatprep.subr.bf16.mxu1 %v608_v9 }
  0x20   : > { %550 = vmatpush3.bf16.msra.mxu0 %v608_v9  ;;  %575 = vmatpush3.bf16.msra.mxu1 %v608_v9 }
  0x21   : > { %551 = vmatprep.subr.bf16.mxu0 %v609_v10  ;;  %568 = vmatprep.subr.bf16.mxu1 %v609_v10 }
  0x24   : > { %552 = vmatpush3.bf16.msra.mxu0 %v609_v10  ;;  %576 = vmatpush3.bf16.msra.mxu1 %v609_v10 }
  0x27   : > { %554 = vmatmul.mubr.bf16.vlgmr.msra.gmra.mrb[0].mxu0 %v612_v11  ;;  %558 = vmatmul.mubr.bf16.vlgmr.msra.gmra.mrb[0].mxu1 %v613_v12 }
  0xfa   : > { %v555_v17 = vpop.f32.mrb[0].mxu0  ;;  %v559_v18 = vpop.f32.mrb[0].mxu1 }
  0xfb   : > { %v388_v21 = vadd.f32 %v555_v17, %v215_v13  ;;  %v392_v22 = vadd.f32 %v559_v18, %v219_v14  ;;  %v355_v23 = vpop.f32.mrb[1].mxu0  ;;  %v371_v24 = vpop.f32.mrb[1].mxu1 }
  0xfc   : > { %v386_v27 = vadd.f32 %v355_v23, %v213_v15  ;;  %v390_v28 = vadd.f32 %v371_v24, %v217_v16  ;;  %v556_v29 = vpop.f32.mrb[2].mxu0  ;;  %v560_v30 = vpop.f32.mrb[2].mxu1 }
  0xfd   : > { %397 = vst.msk [vmem:[#allocation2 + $0x10] sm:$0xff] %vm203_vm0, %v388_v21  ;;  %401 = vst.msk [vmem:[#allocation2 + $0x30] sm:$0xff] %vm203_vm0, %v392_v22  ;;  %v389_v31 = vadd.f32 %v556_v29, %v216_v19  ;;  %v393_v32 = vadd.f32 %v560_v30, %v220_v20  ;;  %v358_v33 = vpop.f32.mrb[3].mxu0  ;;  %v374_v34 = vpop.f32.mrb[3].mxu1 }
  0xfe   : > { %395 = vst.msk [vmem:[#allocation2] sm:$0xff] %vm203_vm0, %v386_v27  ;;  %399 = vst.msk [vmem:[#allocation2 + $0x20] sm:$0xff] %vm203_vm0, %v390_v28  ;;  %v387_v35 = vadd.f32 %v358_v33, %v214_v25  ;;  %v391_v36 = vadd.f32 %v374_v34, %v218_v26 }
  0xff   : > { %398 = vst.msk [vmem:[#allocation2 + $0x18] sm:$0xff] %vm203_vm0, %v389_v31  ;;  %402 = vst.msk [vmem:[#allocation2 + $0x38] sm:$0xff] %vm203_vm0, %v393_v32 }
 0x100   : > { %396 = vst.msk [vmem:[#allocation2 + $0x8] sm:$0xff] %vm203_vm0, %v387_v35  ;;  %400 = vst.msk [vmem:[#allocation2 + $0x28] sm:$0xff] %vm203_vm0, %v391_v36 }
 0x104   : > { %v408_v38 = vld [vmem:[#allocation2 + $0x10] sm:$0xff] }
 0x105   : > { %v412_v39 = vld [vmem:[#allocation2 + $0x30] sm:$0xff]  ;;  %v418_v40 = vadd.f32 %v415_v37, %v408_v38  ;;  %v406_v42 = vld [vmem:[#allocation2] sm:$0xff] }
 0x106   : > { %v422_v41 = vadd.f32 %v415_v37, %v412_v39  ;;  %v410_v43 = vld [vmem:[#allocation2 + $0x20] sm:$0xff]  ;;  %v416_v44 = vadd.f32 %v415_v37, %v406_v42  ;;  %v409_v46 = vld [vmem:[#allocation2 + $0x18] sm:$0xff] }
 0x107   : > { %v420_v45 = vadd.f32 %v415_v37, %v410_v43  ;;  %v413_v47 = vld [vmem:[#allocation2 + $0x38] sm:$0xff]  ;;  %426 = vst.msk [vmem:[%s196_s17 + $0x10] sm:$0xff] %vm203_vm0, %v418_v40  ;;  %v419_v48 = vadd.f32 %v415_v37, %v409_v46  ;;  %v407_v50 = vld [vmem:[#allocation2 + $0x8] sm:$0xff] }
 0x108   : > { %430 = vst.msk [vmem:[%s196_s17 + $0x30] sm:$0xff] %vm203_vm0, %v422_v41  ;;  %v423_v49 = vadd.f32 %v415_v37, %v413_v47  ;;  %v411_v51 = vld [vmem:[#allocation2 + $0x28] sm:$0xff]  ;;  %424 = vst.msk [vmem:[%s196_s17] sm:$0xff] %vm203_vm0, %v416_v44  ;;  %v417_v52 = vadd.f32 %v415_v37, %v407_v50 }
 0x109   : > { %428 = vst.msk [vmem:[%s196_s17 + $0x20] sm:$0xff] %vm203_vm0, %v420_v45  ;;  %v421_v53 = vadd.f32 %v415_v37, %v411_v51  ;;  %427 = vst.msk [vmem:[%s196_s17 + $0x18] sm:$0xff] %vm203_vm0, %v419_v48 }
 0x10a   : > { %431 = vst.msk [vmem:[%s196_s17 + $0x38] sm:$0xff] %vm203_vm0, %v423_v49  ;;  %425 = vst.msk [vmem:[%s196_s17 + $0x8] sm:$0xff] %vm203_vm0, %v417_v52 }
 0x10b   : > { %429 = vst.msk [vmem:[%s196_s17 + $0x28] sm:$0xff] %vm203_vm0, %v421_v53 }
 0x10c PF: > { %s14_s16 = sadd.s32 1, %s636_s16   ;;  %s757_s14 = smov %s632_s15 }
 0x10d   : > { %p11_p5 = scmp.ge.s32.totalorder %s14_s16, 4   ;;  %s758_s15 = smov %s760_s2 }
 0x10f   :  { %13 = sbr.rel (!%p11_p5) target bundleno = 2 (0x2), region = 71 }

// kernel: graph_ebc_forward.2
= control target key start
LH: loop header
LB: loop body
LE: loop exit
PB: predicated region body
PF: predicated region fallthrough
CT: control target
= control target key end

     0   :  { %s821_s15 = smov 0   ;;  %s823_s16 = smov 0   ;;  %s929_s0 = inlined_call_operand.vmem [shape: bf16[128,128], index: 0, kind: input, shape index: {}]   ;;  %s930_s1 = inlined_call_operand.vmem [shape: bf16[128,32], index: 1, kind: input, shape index: {}]   ;;  %s931_s2 = inlined_call_operand.vmem [shape: f32[1,32], index: 2, kind: input, shape index: {}]   ;;  %s932_s3 = inlined_call_operand.vmem [shape: f32[1,32], index: 3, kind: input, shape index: {}]   ;;  %s933_s4 = inlined_call_operand.vmem [shape: bf16[128,1], index: 4, kind: output, shape index: {}]  }
   0x1   :  { %s825_s17 = smov 0  }
   0x2 LB: > { %s26_s18 = sadd.s32 1, %s787_s16  ;;  %p657_p0 = scmp.ge.s32.totalorder %s791_s17, 1  ;;  %s791_s17 = sphi %s825_s17, %s14_s17   ;;  %s787_s16 = sphi %s823_s16, %s935_s16   ;;  %s783_s15 = sphi %s821_s15, %s934_s15  }
   0x3   : > { %p28_p1 = scmp.ge.s32.totalorder %s26_s18, 2  ;;  %p180_p2 = scmp.lt.s32.totalorder %s791_s17, 3 }
   0x5   : > { %s937_s18 = smov (%p28_p1, %s26_s18), 0  ;;  %p181_p3 = pnand %p657_p0, %p180_p2 }
   0x6   : > { %v757_v0 = vld [vmem:[%s930_s1] sm:$0xff] (!%p181_p3)   ;;  %s658_s21 = sshll.u32 (!%p181_p3), %s783_s15, 3  ;;  %v758_v1 = vld [vmem:[%s930_s1 + $0x8] sm:$0xff] (!%p181_p3)   ;;  %vm229_vm0 = vcmask (!%p181_p3), 261120   ;;  %v759_v2 = vld [vmem:[%s930_s1 + $0x10] sm:$0xff] (!%p181_p3)   ;;  %v793_v3 = vmov (!%p181_p3), 0.0  }
   0x7   : > { %184 = sbr.rel (%p181_p3) target bundleno = 428 (0x1ac), region = 36  ;;  %p210_p4 = scmp.lt.s32.totalorder (!%p181_p3), %s658_s21, 15  ;;  %690 = vmatprep.subr.bf16.mxu0 (!%p181_p3), %v757_v0  ;;  %714 = vmatprep.subr.bf16.mxu1 (!%p181_p3), %v757_v0  ;;  %232 = vst.msk [vmem:[#allocation2 + $0x10] sm:$0xff] (!%p181_p3), %vm229_vm0, %v793_v3  ;;  %230 = vst.msk [vmem:[#allocation2] sm:$0xff] (!%p181_p3), %vm229_vm0, %v793_v3  ;;  %v760_v4 = vld [vmem:[%s930_s1 + $0x18] sm:$0xff] (!%p181_p3)   ;;  %v761_v7 = vld [vmem:[%s930_s1 + $0x20] sm:$0xff] (!%p181_p3)  }
   0x8   : > { %691 = vmatpush3.bf16.msra.mxu0 (!%p181_p3), %v757_v0  ;;  %722 = vmatpush3.bf16.msra.mxu1 (!%p181_p3), %v757_v0  ;;  %231 = vst.msk [vmem:[#allocation2 + $0x8] sm:$0xff] (!%p181_p3), %vm229_vm0, %v793_v3  ;;  %233 = vst.msk [vmem:[#allocation2 + $0x18] sm:$0xff] (!%p181_p3), %vm229_vm0, %v793_v3  ;;  %v762_v8 = vld [vmem:[%s930_s1 + $0x28] sm:$0xff] (!%p181_p3)   ;;  %v763_v9 = vld [vmem:[%s930_s1 + $0x30] sm:$0xff] (!%p181_p3)   ;;  %vm574_vm1 = vcmask (!%p181_p3), 3072  }
   0x9   : > { %692 = vmatprep.subr.bf16.mxu0 (!%p181_p3), %v758_v1  ;;  %715 = vmatprep.subr.bf16.mxu1 (!%p181_p3), %v758_v1  ;;  %234 = vst.msk [vmem:[#allocation2 + $0x20] sm:$0xff] (!%p181_p3), %vm229_vm0, %v793_v3  ;;  %235 = vst.msk [vmem:[#allocation2 + $0x28] sm:$0xff] (!%p181_p3), %vm229_vm0, %v793_v3  ;;  %v764_v10 = vld [vmem:[%s930_s1 + $0x38] sm:$0xff] (!%p181_p3)   ;;  %v674_v37 = vld [vmem:[%s931_s2] ss:$0 sm:$0xff] (!%p181_p3) }
   0xa   : > { %236 = vst.msk [vmem:[#allocation2 + $0x30] sm:$0xff] (!%p181_p3), %vm229_vm0, %v793_v3  ;;  %237 = vst.msk [vmem:[#allocation2 + $0x38] sm:$0xff] (!%p181_p3), %vm229_vm0, %v793_v3  ;;  %v675_v42 = vld [vmem:[%s932_s3] ss:$0 sm:$0xff] (!%p181_p3) }
   0xc   : > { %693 = vmatpush3.bf16.msra.mxu0 (!%p181_p3), %v758_v1  ;;  %723 = vmatpush3.bf16.msra.mxu1 (!%p181_p3), %v758_v1 }
   0xd   : > { %694 = vmatprep.subr.bf16.mxu0 (!%p181_p3), %v759_v2  ;;  %716 = vmatprep.subr.bf16.mxu1 (!%p181_p3), %v759_v2 }
   0xe   : > { %s939_s21 = smov (!%p210_p4, %s658_s21), 15  ;;  %v241_v13 = vld [vmem:[#allocation2 + $0x10] sm:$0xff]  ;;  %v239_v15 = vld [vmem:[#allocation2] sm:$0xff] }
   0xf   : > { %s659_s26 = sshll.u32 %s939_s21, 2  ;;  %v242_v19 = vld [vmem:[#allocation2 + $0x18] sm:$0xff]  ;;  %v240_v25 = vld [vmem:[#allocation2 + $0x8] sm:$0xff] }
  0x10   : > { %s864_s29 = scalar_lea.vmem %s929_s0, %s659_s26  ;;  %695 = vmatpush3.bf16.msra.mxu0 %v759_v2  ;;  %724 = vmatpush3.bf16.msra.mxu1 %v759_v2  ;;  %v243_v16 = vld [vmem:[#allocation2 + $0x20] sm:$0xff]  ;;  %v244_v26 = vld [vmem:[#allocation2 + $0x28] sm:$0xff]  ;;  %s222_s24 = scalar_lea.vmem %s933_s4, %s659_s26 }
  0x11   : > { %v765_v5 = vld [vmem:[%s864_s29] sm:$0xff]   ;;  %v767_v6 = vld [vmem:[%s864_s29 + $0x10] sm:$0xff]   ;;  %696 = vmatprep.subr.bf16.mxu0 %v760_v4  ;;  %717 = vmatprep.subr.bf16.mxu1 %v760_v4  ;;  %v766_v11 = vld [vmem:[%s864_s29 + $0x8] sm:$0xff]  }
  0x12   : > { %706 = vmatprep.mubr.bf16.mxu0 %v765_v5  ;;  %710 = vmatprep.mubr.bf16.mxu1 %v767_v6  ;;  %v768_v12 = vld [vmem:[%s864_s29 + $0x18] sm:$0xff]   ;;  %v246_v20 = vld [vmem:[#allocation2 + $0x38] sm:$0xff] }
  0x13   : > { %v245_v14 = vld [vmem:[#allocation2 + $0x30] sm:$0xff] }
  0x14   : > { %697 = vmatpush3.bf16.msra.mxu0 %v760_v4  ;;  %725 = vmatpush3.bf16.msra.mxu1 %v760_v4 }
  0x15   : > { %698 = vmatprep.subr.bf16.mxu0 %v761_v7  ;;  %718 = vmatprep.subr.bf16.mxu1 %v761_v7 }
  0x18   : > { %699 = vmatpush3.bf16.msra.mxu0 %v761_v7  ;;  %726 = vmatpush3.bf16.msra.mxu1 %v761_v7 }
  0x19   : > { %700 = vmatprep.subr.bf16.mxu0 %v762_v8  ;;  %719 = vmatprep.subr.bf16.mxu1 %v762_v8 }
  0x1c   : > { %701 = vmatpush3.bf16.msra.mxu0 %v762_v8  ;;  %727 = vmatpush3.bf16.msra.mxu1 %v762_v8 }
  0x1d   : > { %702 = vmatprep.subr.bf16.mxu0 %v763_v9  ;;  %720 = vmatprep.subr.bf16.mxu1 %v763_v9 }
  0x20   : > { %703 = vmatpush3.bf16.msra.mxu0 %v763_v9  ;;  %728 = vmatpush3.bf16.msra.mxu1 %v763_v9 }
  0x21   : > { %704 = vmatprep.subr.bf16.mxu0 %v764_v10  ;;  %721 = vmatprep.subr.bf16.mxu1 %v764_v10 }
  0x24   : > { %705 = vmatpush3.bf16.msra.mxu0 %v764_v10  ;;  %729 = vmatpush3.bf16.msra.mxu1 %v764_v10 }
  0x27   : > { %707 = vmatmul.mubr.bf16.vlgmr.msra.gmra.mrb[0].mxu0 %v766_v11  ;;  %711 = vmatmul.mubr.bf16.vlgmr.msra.gmra.mrb[0].mxu1 %v768_v12 }
  0xfa   : > { %v708_v17 = vpop.f32.mrb[0].mxu0  ;;  %v712_v18 = vpop.f32.mrb[0].mxu1 }
  0xfb   : > { %v414_v21 = vadd.f32 %v708_v17, %v241_v13  ;;  %v381_v22 = vpop.f32.mrb[1].mxu0  ;;  %v418_v23 = vadd.f32 %v712_v18, %v245_v14  ;;  %v397_v24 = vpop.f32.mrb[1].mxu1  ;;  %v513_v17 = vlaneseq  ;;  %v795_v18 = vmov 1985246804  }
  0xfc   : > { %v412_v27 = vadd.f32 %v381_v22, %v239_v15  ;;  %v709_v28 = vpop.f32.mrb[2].mxu0  ;;  %v416_v29 = vadd.f32 %v397_v24, %v243_v16  ;;  %v713_v30 = vpop.f32.mrb[2].mxu1  ;;  %v794_v15 = vmov 839922192  }
  0xfd   : > { %423 = vst.msk [vmem:[#allocation2 + $0x10] sm:$0xff] %vm229_vm0, %v414_v21  ;;  %427 = vst.msk [vmem:[#allocation2 + $0x30] sm:$0xff] %vm229_vm0, %v418_v23  ;;  %v415_v31 = vadd.f32 %v709_v28, %v242_v19  ;;  %v384_v32 = vpop.f32.mrb[3].mxu0  ;;  %v419_v33 = vadd.f32 %v713_v30, %v246_v20  ;;  %v400_v34 = vpop.f32.mrb[3].mxu1  ;;  %v511_v16 = vunpack.c.l.s4 %v794_v15  ;;  %v518_v19 = vunpack.c.l.s4 %v795_v18 }
  0xfe   : > { %421 = vst.msk [vmem:[#allocation2] sm:$0xff] %vm229_vm0, %v412_v27  ;;  %425 = vst.msk [vmem:[#allocation2 + $0x20] sm:$0xff] %vm229_vm0, %v416_v29  ;;  %v413_v35 = vadd.f32 %v384_v32, %v240_v25  ;;  %v417_v36 = vadd.f32 %v400_v34, %v244_v26  ;;  %v514_v21 = vshrl.u32 %v513_v17, 7 }
  0xff   : > { %424 = vst.msk [vmem:[#allocation2 + $0x18] sm:$0xff] %vm229_vm0, %v415_v31  ;;  %428 = vst.msk [vmem:[#allocation2 + $0x38] sm:$0xff] %vm229_vm0, %v419_v33  ;;  %v512_v20 = vunpack.c.0.s8 %v511_v16  ;;  %v519_v22 = vunpack.c.0.s8 %v518_v19 }
 0x100   : > { %422 = vst.msk [vmem:[#allocation2 + $0x8] sm:$0xff] %vm229_vm0, %v413_v35  ;;  %426 = vst.msk [vmem:[#allocation2 + $0x28] sm:$0xff] %vm229_vm0, %v417_v36 }
 0x101   : > { %v515_v25 = vsub.s32 %v512_v20, %v514_v21  ;;  %v522_v26 = vsub.s32 %v519_v22, %v514_v21 }
 0x104   : > { %v434_v38 = vld [vmem:[#allocation2 + $0x10] sm:$0xff] }
 0x105   : > { %v449_v39 = vadd.f32 %v674_v37, %v434_v38  ;;  %v432_v40 = vld [vmem:[#allocation2] sm:$0xff]  ;;  %v438_v57 = vld [vmem:[#allocation2 + $0x30] sm:$0xff] }
 0x106   : > { %v436_v41 = vld [vmem:[#allocation2 + $0x20] sm:$0xff]  ;;  %v447_v43 = vadd.f32 %v674_v37, %v432_v40  ;;  %v435_v44 = vld [vmem:[#allocation2 + $0x18] sm:$0xff]  ;;  %v453_v2 = vadd.f32 %v674_v37, %v438_v57 }
 0x107   : > { %v451_v45 = vadd.f32 %v674_v37, %v436_v41  ;;  %v457_v46 = vmax.f32 %v449_v39, 0.0  ;;  %v450_v47 = vadd.f32 %v674_v37, %v435_v44  ;;  %v437_v48 = vld [vmem:[#allocation2 + $0x28] sm:$0xff]  ;;  %v439_v54 = vld [vmem:[#allocation2 + $0x38] sm:$0xff] }
 0x108   : > { %v433_v49 = vld [vmem:[#allocation2 + $0x8] sm:$0xff]  ;;  %v455_v50 = vmax.f32 %v447_v43, 0.0  ;;  %v452_v52 = vadd.f32 %v674_v37, %v437_v48  ;;  %v454_v63 = vadd.f32 %v674_v37, %v439_v54  ;;  %v461_v8 = vmax.f32 %v453_v2, 0.0 }
 0x109   : > { %v459_v51 = vmax.f32 %v451_v45, 0.0  ;;  %v448_v53 = vadd.f32 %v674_v37, %v433_v49  ;;  %v472_v55 = vmul.f32 %v675_v42, %v457_v46  ;;  %v458_v56 = vmax.f32 %v450_v47, 0.0 }
 0x10a   : > { %v470_v58 = vmul.f32 %v675_v42, %v455_v50  ;;  %v460_v62 = vmax.f32 %v452_v52, 0.0  ;;  %v462_v6 = vmax.f32 %v454_v63, 0.0  ;;  %v476_v12 = vmul.f32 %v675_v42, %v461_v8 }
 0x10b   : > { %v474_v59 = vmul.f32 %v675_v42, %v459_v51  ;;  %v484_v60 = vsel %vm229_vm0, %v472_v55, 0.0  ;;  %v473_v61 = vmul.f32 %v675_v42, %v458_v56  ;;  %v456_v1 = vmax.f32 %v448_v53, 0.0 }
 0x10c   : > { %485 = vadd.xlane.f32.xlu1 %v484_v60  ;;  %v478_v0 = vsel %vm229_vm0, %v470_v58, 0.0  ;;  %v475_v5 = vmul.f32 %v675_v42, %v460_v62  ;;  %v477_v10 = vmul.f32 %v675_v42, %v462_v6  ;;  %v496_v14 = vsel %vm229_vm0, %v476_v12, 0.0 }
 0x10d   : > { %479 = vadd.xlane.f32.xlu0 %v478_v0  ;;  %v490_v3 = vsel %vm229_vm0, %v474_v59, 0.0  ;;  %v487_v4 = vsel %vm229_vm0, %v473_v61, 0.0  ;;  %v471_v7 = vmul.f32 %v675_v42, %v456_v1 }
 0x10e   : > { %v493_v9 = vsel %vm229_vm0, %v475_v5, 0.0  ;;  %v499_v13 = vsel %vm229_vm0, %v477_v10, 0.0 }
 0x10f   : > { %v481_v11 = vsel %vm229_vm0, %v471_v7, 0.0 }
 0x110   : > { %488 = vadd.xlane.f32.xlu1 %v487_v4 }
 0x111   : > { %491 = vadd.xlane.f32.xlu0 %v490_v3 }
 0x114   : > { %494 = vadd.xlane.f32.xlu1 %v493_v9 }
 0x115   : > { %482 = vadd.xlane.f32.xlu0 %v481_v11 }
 0x118   : > { %500 = vadd.xlane.f32.xlu1 %v499_v13 }
 0x119   : > { %497 = vadd.xlane.f32.xlu0 %v496_v14 }
 0x199   : > { %v486_v23 = vpop.xlane.xlu1 %485 }
 0x19a   : > { %v480_v24 = vpop.xlane.xlu0 %479 }
 0x19d   : > { %v489_v27 = vpop.xlane.xlu1 %488 }
 0x19e   : > { %v503_v28 = vpack.c.bf16 %v489_v27, %v486_v23  ;;  %v492_v29 = vpop.xlane.xlu0 %491 }
 0x1a0   : > { %v530_v30 = vrot.slane %v503_v28, %v515_v25  ;;  %v537_v31 = vrot.slane %v503_v28, %v522_v26 }
 0x1a1   : > { %v495_v32 = vpop.xlane.xlu1 %494 }
 0x1a2   : > { %577 = vst.msk [vmem:[%s222_s24 + $0x8] sm:$0xf] %vm574_vm1, %v530_v30  ;;  %578 = vst.msk [vmem:[%s222_s24 + $0xc] sm:$0xf] %vm574_vm1, %v537_v31  ;;  %v504_v33 = vpack.c.bf16 %v495_v32, %v492_v29  ;;  %v483_v34 = vpop.xlane.xlu0 %482 }
 0x1a3   : > { %v502_v35 = vpack.c.bf16 %v483_v34, %v480_v24 }
 0x1a4   : > { %v544_v36 = vrot.slane %v504_v33, %v515_v25  ;;  %v551_v37 = vrot.slane %v504_v33, %v522_v26 }
 0x1a5   : > { %v516_v38 = vrot.slane %v502_v35, %v515_v25  ;;  %v523_v39 = vrot.slane %v502_v35, %v522_v26  ;;  %v501_v40 = vpop.xlane.xlu1 %500 }
 0x1a6   : > { %579 = vst.msk [vmem:[%s222_s24 + $0x10] sm:$0xf] %vm574_vm1, %v544_v36  ;;  %580 = vst.msk [vmem:[%s222_s24 + $0x14] sm:$0xf] %vm574_vm1, %v551_v37  ;;  %v498_v41 = vpop.xlane.xlu0 %497 }
 0x1a7   : > { %575 = vst.msk [vmem:[%s222_s24] sm:$0xf] %vm574_vm1, %v516_v38  ;;  %576 = vst.msk [vmem:[%s222_s24 + $0x4] sm:$0xf] %vm574_vm1, %v523_v39  ;;  %v505_v42 = vpack.c.bf16 %v501_v40, %v498_v41 }
 0x1a9   : > { %v558_v43 = vrot.slane %v505_v42, %v515_v25  ;;  %v565_v44 = vrot.slane %v505_v42, %v522_v26 }
 0x1ab   : > { %581 = vst.msk [vmem:[%s222_s24 + $0x18] sm:$0xf] %vm574_vm1, %v558_v43  ;;  %582 = vst.msk [vmem:[%s222_s24 + $0x1c] sm:$0xf] %vm574_vm1, %v565_v44 }
 0x1ac PF: > { %s14_s17 = sadd.s32 1, %s791_s17   ;;  %s934_s15 = smov %s787_s16 }
 0x1ad   : > { %p11_p5 = scmp.ge.s32.totalorder %s14_s17, 4   ;;  %s935_s16 = smov %s937_s18 }
 0x1af   :  { %13 = sbr.rel (!%p11_p5) target bundleno = 2 (0x2), region = 75 }

</bundles_post_ra>
